<compile_context>
chip_gen: v7x
topology: tpu7x:2x2x1
jax: 0.10.0
libtpu: 0.0.40
codegen_flags: <defaults>
</compile_context>

<pallas_src>
import math
import jax
import jax.numpy as jnp
from jax.experimental import pallas as pl
from jax.experimental.pallas import tpu as pltpu


# ---------------------------------------------------------------------------
# Kernel body: pure VPU elementwise multiply; the (1, tn) weight row broadcasts
# over the sublane (row) axis.  The same body serves every grid shape -- the
# BlockSpecs do all the tiling.  No per-iteration broadcasts inside the body.
# ---------------------------------------------------------------------------
def _metric_calc_kernel(h_ref, w_ref, o_ref):
    o_ref[...] = h_ref[...] * w_ref[...]


_VMEM_TILE_BUDGET = 20 * 1024 * 1024   # cap on double-buffered (h + out) tiles
_VMEM_LIMIT_BYTES = 48 * 1024 * 1024   # > scoped defaults, < v7x 64 MiB physical
_COL_TILE_MAX = 2048                   # tile nhid only when wider than this


def _sublane_multiple(dtype) -> int:
    # f32 -> 8 rows, bf16 -> 16, int8/fp8 -> 32 (sublane packing of the vreg).
    return max(8, 32 // jnp.dtype(dtype).itemsize)


def _round_up(x: int, m: int) -> int:
    return ((x + m - 1) // m) * m


def _pick_tiles(rows: int, cols: int, dtype):
    """Largest VMEM-budgeted row tile; column tile only for very wide cols."""
    itemsize = jnp.dtype(dtype).itemsize
    sub = _sublane_multiple(dtype)

    # Column tile: full width unless very wide; 2048 is a 128-lane multiple so
    # stores stay unmasked on every full block.
    tn = cols if cols <= _COL_TILE_MAX else _COL_TILE_MAX

    # Row tile: biggest sublane-multiple whose double-buffered footprint
    # (2 bufs x (h tile + out tile) = 4 * tm * tn * bytes) fits the budget.
    tm = _VMEM_TILE_BUDGET // (4 * tn * itemsize)
    tm = max(sub, (tm // sub) * sub)

    if tm >= rows:
        if rows > 2 * sub:
            # Keep >= 2 row blocks so v7x's two TensorCores both get work.
            tm = _round_up(pl.cdiv(rows, 2), sub)
        else:
            tm = rows  # single block; a full-extent block dim is always legal
    return tm, tn


def _metric_calc_2d(h, weight, tm, tn):
    rows, cols = h.shape
    grid = (pl.cdiv(rows, tm), pl.cdiv(cols, tn))
    return pl.pallas_call(
        _metric_calc_kernel,
        out_shape=jax.ShapeDtypeStruct((rows, cols), h.dtype),
        grid_spec=pltpu.PrefetchScalarGridSpec(
            num_scalar_prefetch=0,
            grid=grid,
            in_specs=[
                pl.BlockSpec((tm, tn), lambda i, j: (i, j)),  # h tile
                pl.BlockSpec((1, tn), lambda i, j: (0, j)),   # weight row (resident over i)
            ],
            out_specs=pl.BlockSpec((tm, tn), lambda i, j: (i, j)),
        ),
        compiler_params=pltpu.CompilerParams(
            dimension_semantics=("parallel", "parallel"),
            vmem_limit_bytes=_VMEM_LIMIT_BYTES,
        ),
    )(h, weight)


def metric_calc_layer(h, weight):
    """Pallas equivalent of MetricCalcLayer.forward: h * weight (row broadcast)."""
    N, nhid = h.shape
    assert weight.shape == (1, nhid)

    # Lane-densification for narrow hidden dims: repack so the last dim is a
    # full 128-lane row (weight tiled to match the packing), run the same
    # kernel, then reshape back.  Pure layout plumbing -- semantics unchanged.
    if nhid < 128 and 128 % nhid == 0:
        pack = 128 // nhid
        n_pad = _round_up(N, pack)
        h_in = h if n_pad == N else jnp.pad(h, ((0, n_pad - N), (0, 0)))
        h_dense = h_in.reshape(n_pad * nhid // 128, 128)
        w_dense = jnp.tile(weight, (1, pack))
        tm, tn = _pick_tiles(h_dense.shape[0], 128, h.dtype)
        out = _metric_calc_2d(h_dense, w_dense, tm, tn)
        out = out.reshape(n_pad, nhid)
        return out[:N] if n_pad != N else out

    tm, tn = _pick_tiles(N, nhid, h.dtype)
    return _metric_calc_2d(h, weight, tm, tn)


def xavier_uniform(key, shape, dtype=jnp.float32):
    # nn.init.xavier_uniform_ for a 2D (fan_out, fan_in) tensor:
    # bound = sqrt(6 / (fan_in + fan_out)); shape (1, nhid) -> fan_out=1, fan_in=nhid
    fan_out, fan_in = shape
    bound = math.sqrt(6.0 / (fan_in + fan_out))
    return jax.random.uniform(key, shape, dtype=dtype, minval=-bound, maxval=bound)


if __name__ == "__main__":
    key = jax.random.PRNGKey(0)
    k_h, k_w, k_h2, k_w2 = jax.random.split(key, 4)

    # Small shape matching the module (nhid < 128 -> lane-dense path).
    N, nhid = 16, 32
    h = jax.random.normal(k_h, (N, nhid), dtype=jnp.float32)
    weight = xavier_uniform(k_w, (1, nhid), dtype=jnp.float32)

    out = jax.block_until_ready(metric_calc_layer(h, weight))
    ref = h * weight
    assert out.shape == (N, nhid)
    assert jnp.allclose(out, ref, atol=1e-6, rtol=1e-6)

    # Second (still small) shape exercising the direct multi-row-block path.
    N2, nhid2 = 1024, 256
    h2 = jax.random.normal(k_h2, (N2, nhid2), dtype=jnp.float32)
    w2 = xavier_uniform(k_w2, (1, nhid2), dtype=jnp.float32)
    out2 = jax.block_until_ready(metric_calc_layer(h2, w2))
    assert jnp.allclose(out2, h2 * w2, atol=1e-6, rtol=1e-6)

    print("KERNEL_OK")
</pallas_src>

<mosaic_0001>
module attributes {stable_mosaic.version = 11 : i64} {
  func.func @_metric_calc_kernel(%arg0: i32, %arg1: i32, %arg2: memref<4x128xf32, #tpu.memory_space<vmem>>, %arg3: memref<1x128xf32, #tpu.memory_space<vmem>>, %arg4: memref<4x128xf32, #tpu.memory_space<vmem>>) attributes {dimension_semantics = [#tpu.dimension_semantics<parallel>, #tpu.dimension_semantics<parallel>], iteration_bounds = array<i64: 1, 1>, scalar_prefetch = 0 : i64, scratch_operands = 0 : i64, tpu.core_type = #tpu.core_type<tc>, window_params = [{transform_indices = @transform_0, window_bounds = array<i64: 4, 128>}, {transform_indices = @transform_1, window_bounds = array<i64: 1, 128>}, {transform_indices = @transform_2, window_bounds = array<i64: 4, 128>}]} {
    %c0 = arith.constant 0 : index
    %c0_0 = arith.constant 0 : index
    %0 = vector.load %arg2[%c0, %c0_0] : memref<4x128xf32, #tpu.memory_space<vmem>>, vector<4x128xf32>
    %c0_1 = arith.constant 0 : index
    %c0_2 = arith.constant 0 : index
    %1 = vector.load %arg3[%c0_1, %c0_2] : memref<1x128xf32, #tpu.memory_space<vmem>>, vector<1x128xf32>
    %2 = vector.broadcast %1 : vector<1x128xf32> to vector<4x128xf32>
    %3 = arith.mulf %0, %2 : vector<4x128xf32>
    %c0_3 = arith.constant 0 : index
    %c0_4 = arith.constant 0 : index
    %4 = vector.load %arg4[%c0_3, %c0_4] : memref<4x128xf32, #tpu.memory_space<vmem>>, vector<4x128xf32>
    tpu.vector_store %arg4[%c0_3, %c0_4], %3 {strides = array<i32>} : memref<4x128xf32, #tpu.memory_space<vmem>>, vector<4x128xf32>,
    return
  }
  func.func @transform_0(%arg0: i32, %arg1: i32) -> (i32, i32) {
    %c0_i32 = arith.constant 0 : i32
    return %arg0, %arg1 : i32, i32
  }
  func.func @transform_1(%arg0: i32, %arg1: i32) -> (i32, i32) {
    %c0_i32 = arith.constant 0 : i32
    %c0_i32_0 = arith.constant 0 : i32
    return %c0_i32, %arg1 : i32, i32
  }
  func.func @transform_2(%arg0: i32, %arg1: i32) -> (i32, i32) {
    %c0_i32 = arith.constant 0 : i32
    return %arg0, %arg1 : i32, i32
  }
}

</mosaic_0001>

<bundles_post_ra>
// kernel: tpu_custom_call.1
= control target key start
LH: loop header
LB: loop body
LE: loop exit
PB: predicated region body
PF: predicated region fallthrough
CT: control target
= control target key end

     0   :  { %7 = vsyncpa [#allocation3], 0  ;;  %s144_s0 = inlined_call_operand.hbm [shape: f32[4,128], index: 0, kind: input, shape index: {}]   ;;  %s145_s1 = inlined_call_operand.vmem [shape: f32[1,128], index: 1, kind: input, shape index: {}]   ;;  %s146_s2 = inlined_call_operand.hbm [shape: f32[4,128], index: 2, kind: output, shape index: {}]  }
   0x1   :  { %8 = vsyncpa [#allocation4], 0  ;;  %s100_s9 = smov [#allocation2]   ;;  %s52_s13 = scalar_lea.hbm %s144_s0, 64 }
   0x2   :  { %s15_s10 = sshll.u32 %s100_s9, 4  ;;  %p53_p0 = scmp.ne.s32.totalorder %s144_s0, %s52_s13  ;;  %s16_s10 = int_to_ptr.vmem [resolvable:$true] %s15_s10 }
   0x3   :  { %p56_p1 = scmp.lt.u32.totalorder %s52_s13, %s144_s0 }
   0x5   :  { %p58_p2 = pnand %p56_p1, %p53_p0 }
   0x7   :  { %61 = shalt.err (!%p58_p2)
}
   0x8   :  { %s62_s18 = scalar_lea.vmem %s16_s10, 64  ;;  %p67_p4 = scmp.lt.s32.totalorder %s16_s10, %s16_s10 }
   0x9   :  { %p63_p3 = scmp.ne.s32.totalorder %s16_s10, %s62_s18  ;;  %p68_p5 = scmp.lt.s32.totalorder %s62_s18, %s62_s18 }
   0xb   :  { %p69_p6 = por %p68_p5, %p67_p4 }
   0xd   :  { %p70_p7 = pnand %p69_p6, %p63_p3 }
   0xf   :  { %73 = shalt.err (!%p70_p7)
}
  0x10   :  { %18 = dma.hbm_to_vmem [thread:$0]  %s144_s0, 64, %s16_s10, [#allocation3]  }
  0x11   :  { %96 = dma.done.wait [#allocation3], 64  }
  0x12   :  { %97 = vsyncadd [#allocation3], 4294967232  ;;  %s101_s21 = smov [#allocation5]   ;;  %v24_v0 = vld [vmem:[#allocation2] sm:$0xf] }
  0x13   :  { %s40_s22 = sshll.u32 %s101_s21, 4  ;;  %v49_v1 = vld [vmem:[%s145_s1] ss:$0 sm:$0xff]  ;;  %s41_s22 = int_to_ptr.vmem [resolvable:$true] %s40_s22 }
  0x14   :  { %v32_v2 = vmul.f32 %v49_v1, %v24_v0  ;;  %s74_s25 = scalar_lea.vmem %s41_s22, 64  ;;  %p79_p9 = scmp.lt.s32.totalorder %s41_s22, %s41_s22 }
  0x15   :  { %p75_p8 = scmp.ne.s32.totalorder %s41_s22, %s74_s25  ;;  %p80_p10 = scmp.lt.s32.totalorder %s74_s25, %s74_s25 }
  0x16   :  { %33 = vst [vmem:[#allocation5] sm:$0xf] %v32_v2 }
  0x17   :  { %p81_p11 = por %p80_p10, %p79_p9 }
  0x19   :  { %p82_p12 = pnand %p81_p11, %p75_p8 }
  0x1b   :  { %85 = shalt.err (!%p82_p12)
}
  0x1c   :  { %s86_s27 = scalar_lea.hbm %s146_s2, 64 }
  0x1d   :  { %p87_p13 = scmp.ne.s32.totalorder %s146_s2, %s86_s27  ;;  %p90_p0 = scmp.lt.u32.totalorder %s86_s27, %s146_s2 }
  0x1f   :  { %p92_p1 = pnand %p90_p0, %p87_p13 }
  0x21   :  { %95 = shalt.err (!%p92_p1)
}
  0x22   :  { %43 = dma.vmem_to_hbm [thread:$0]  %s41_s22, 64, %s146_s2, [#allocation4]  }
  0x23   :  { %98 = dma.done.wait [#allocation4], 64  }
  0x24   :  { %99 = vsyncadd [#allocation4], 4294967232 }
  0x25   :  { %47 = vsyncpa [#allocation3], 1 }
  0x26   :  { %48 = vsyncpa [#allocation4], 1 }

</bundles_post_ra>
